<compile_context>
chip_gen: v7x
topology: tpu7x:2x2x1
jax: 0.10.0
libtpu: 0.0.40
codegen_flags: <defaults>
</compile_context>

<pallas_src>
import jax
import jax.numpy as jnp
from jax.experimental import pallas as pl
from jax.experimental.pallas import tpu as pltpu

LANE = 128        # TPU vreg lane width
SUBLANE_F32 = 8   # f32 sublane tile


def _round_up(n, m):
    return ((n + m - 1) // m) * m


def dqn_kernel(x_ref, w1_ref, b1_ref, w2_ref, b2_ref, w3_ref, b3_ref, o_ref):
    """One batch tile of the fused 3-layer MLP, all-f32 (MXU + f32 accumulate)."""
    x = x_ref[...]                                                    # (tb, D)
    # fc1 + ReLU  -> (tb, F1_p)
    h1 = jnp.dot(x, w1_ref[...], preferred_element_type=jnp.float32) + b1_ref[...]
    h1 = jnp.maximum(h1, 0.0)
    # fc2 + ReLU  -> (tb, F2_p)
    h2 = jnp.dot(h1, w2_ref[...], preferred_element_type=jnp.float32) + b2_ref[...]
    h2 = jnp.maximum(h2, 0.0)
    # fc3 (raw action values, no activation) -> (tb, A_p)
    y = jnp.dot(h2, w3_ref[...], preferred_element_type=jnp.float32) + b3_ref[...]
    # Store only the real action columns (padded columns are exactly 0 and
    # are never written to HBM).
    n_actions = o_ref.shape[-1]
    o_ref[...] = y[:, :n_actions].astype(o_ref.dtype)


def dqn_forward(state, w1, b1, w2, b2, w3, b3, *, tb=None):
    """Fused forward pass. state: (B, D) float32. Returns (B, n_actions) float32."""
    B, D = state.shape
    F1 = w1.shape[1]
    F2 = w2.shape[1]
    A = w3.shape[1]

    # Lane-pad only the tiny, VMEM-resident parameters (one-time DMA, a few KB)
    # so every MXU pass and intermediate activation is lane-dense.  Zero
    # padding is exact for Linear+ReLU.  The state and the output stay
    # unpadded -> minimum HBM traffic on the per-row hot path.
    F1_p = _round_up(F1, LANE)
    F2_p = _round_up(F2, LANE)
    A_p = _round_up(A, LANE)

    def pad2(a, rows, cols):
        a = jnp.asarray(a, jnp.float32).reshape(-1, a.shape[-1])
        return jnp.pad(a, ((0, rows - a.shape[0]), (0, cols - a.shape[1])))

    w1_p = pad2(w1, D, F1_p)
    w2_p = pad2(w2, F1_p, F2_p)
    w3_p = pad2(w3, F2_p, A_p)
    b1_p = pad2(b1, 1, F1_p)
    b2_p = pad2(b2, 1, F2_p)
    b3_p = pad2(b3, 1, A_p)

    # Batch tile: collapse the grid for small batches; for medium batches make
    # at least 2 grid steps so the "parallel" axis shards across v7x's two
    # TensorCores; cap at 1024 rows for big replay batches.
    if tb is None:
        if B <= 256:
            tb = _round_up(B, SUBLANE_F32)
        else:
            tb = min(1024, _round_up(pl.cdiv(B, 2), SUBLANE_F32))
    tb = max(SUBLANE_F32, _round_up(int(tb), SUBLANE_F32))

    grid = (pl.cdiv(B, tb),)  # ragged last tile is fine: rows are independent

    # Weights & biases: whole array resident in VMEM (no pipelining machinery).
    resident = pl.BlockSpec(memory_space=pltpu.MemorySpace.VMEM)

    out = pl.pallas_call(
        dqn_kernel,
        out_shape=jax.ShapeDtypeStruct((B, A), jnp.float32),
        grid=grid,
        in_specs=[
            pl.BlockSpec((tb, D), lambda i: (i, 0)),  # batch tile of the state
            resident,  # fc1 weight (D,   F1_p)
            resident,  # fc1 bias   (1,   F1_p)
            resident,  # fc2 weight (F1_p, F2_p)
            resident,  # fc2 bias   (1,   F2_p)
            resident,  # fc3 weight (F2_p, A_p)
            resident,  # fc3 bias   (1,   A_p)
        ],
        out_specs=pl.BlockSpec((tb, A), lambda i: (i, 0)),
        compiler_params=pltpu.CompilerParams(dimension_semantics=("parallel",)),
    )(state.astype(jnp.float32), w1_p, b1_p, w2_p, b2_p, w3_p, b3_p)

    return out


def init_linear(key, fan_in, fan_out):
    """Deterministic init mirroring PyTorch nn.Linear default:
    U(-1/sqrt(fan_in), 1/sqrt(fan_in)) for weight and bias.
    Weight returned as (fan_in, fan_out) (transposed vs. PyTorch)."""
    kw, kb = jax.random.split(key)
    bound = 1.0 / jnp.sqrt(jnp.float32(fan_in))
    w = jax.random.uniform(kw, (fan_in, fan_out), jnp.float32, -bound, bound)
    b = jax.random.uniform(kb, (1, fan_out), jnp.float32, -bound, bound)
    return w, b


if __name__ == "__main__":
    # Hyperparameters consistent with DeepQNetwork:
    # input_dims=(16,), fc1_dims=32, fc2_dims=32, n_actions=4.
    input_dim = 16
    fc1_dims = 32
    fc2_dims = 32
    n_actions = 4

    key = jax.random.PRNGKey(0)
    k_x, k1, k2, k3 = jax.random.split(key, 4)
    w1, b1 = init_linear(k1, input_dim, fc1_dims)
    w2, b2 = init_linear(k2, fc1_dims, fc2_dims)
    w3, b3 = init_linear(k3, fc2_dims, n_actions)

    def ref_forward(x):
        # Exact f32 PyTorch forward semantics (force full-precision dots).
        hi = jax.lax.Precision.HIGHEST
        h1 = jnp.maximum(jnp.dot(x, w1, precision=hi) + b1, 0.0)
        h2 = jnp.maximum(jnp.dot(h1, w2, precision=hi) + b2, 0.0)
        return jnp.dot(h2, w3, precision=hi) + b3

    # Case 1: tiny batch; batch=12 deliberately not a multiple of 8 to exercise
    # the ragged (masked-write) block path with a single grid step.
    batch = 12
    state = jax.random.normal(k_x, (batch, input_dim), jnp.float32)
    actions = jax.block_until_ready(dqn_forward(state, w1, b1, w2, b2, w3, b3))
    assert actions.shape == (batch, n_actions)
    err1 = float(jnp.max(jnp.abs(actions - ref_forward(state))))
    assert jnp.allclose(actions, ref_forward(state), atol=1e-2, rtol=1e-2), err1

    # Case 2: medium batch -> 2 grid steps (megacore-shardable on v7x) with a
    # ragged final tile; no host-side batch padding anywhere.
    batch2 = 300
    state2 = jax.random.normal(jax.random.PRNGKey(1), (batch2, input_dim), jnp.float32)
    actions2 = jax.block_until_ready(dqn_forward(state2, w1, b1, w2, b2, w3, b3))
    assert actions2.shape == (batch2, n_actions)
    err2 = float(jnp.max(jnp.abs(actions2 - ref_forward(state2))))
    assert jnp.allclose(actions2, ref_forward(state2), atol=1e-2, rtol=1e-2), err2

    print("KERNEL_OK")
</pallas_src>

<mosaic_0001>
module attributes {stable_mosaic.version = 11 : i64} {
  func.func @dqn_kernel(%arg0: i32, %arg1: memref<16x16xf32, #tpu.memory_space<vmem>>, %arg2: memref<16x128xf32, #tpu.memory_space<vmem>>, %arg3: memref<1x128xf32, #tpu.memory_space<vmem>>, %arg4: memref<128x128xf32, #tpu.memory_space<vmem>>, %arg5: memref<1x128xf32, #tpu.memory_space<vmem>>, %arg6: memref<128x128xf32, #tpu.memory_space<vmem>>, %arg7: memref<1x128xf32, #tpu.memory_space<vmem>>, %arg8: memref<16x4xf32, #tpu.memory_space<vmem>>) attributes {dimension_semantics = [#tpu.dimension_semantics<parallel>], iteration_bounds = array<i64: 1>, scalar_prefetch = 0 : i64, scratch_operands = 0 : i64, tpu.core_type = #tpu.core_type<tc>, window_params = [{transform_indices = @transform_0, window_bounds = array<i64: 16, 16>}, {pipeline_mode = #tpu.pipeline_mode<synchronous>, transform_indices = @transform_1, window_bounds = array<i64: 16, 128>}, {pipeline_mode = #tpu.pipeline_mode<synchronous>, transform_indices = @transform_2, window_bounds = array<i64: 1, 128>}, {pipeline_mode = #tpu.pipeline_mode<synchronous>, transform_indices = @transform_3, window_bounds = array<i64: 128, 128>}, {pipeline_mode = #tpu.pipeline_mode<synchronous>, transform_indices = @transform_4, window_bounds = array<i64: 1, 128>}, {pipeline_mode = #tpu.pipeline_mode<synchronous>, transform_indices = @transform_5, window_bounds = array<i64: 128, 128>}, {pipeline_mode = #tpu.pipeline_mode<synchronous>, transform_indices = @transform_6, window_bounds = array<i64: 1, 128>}, {transform_indices = @transform_7, window_bounds = array<i64: 16, 4>}]} {
    %c0 = arith.constant 0 : index
    %c0_0 = arith.constant 0 : index
    %0 = vector.load %arg1[%c0, %c0_0] : memref<16x16xf32, #tpu.memory_space<vmem>>, vector<16x16xf32>
    %c0_1 = arith.constant 0 : index
    %c0_2 = arith.constant 0 : index
    %1 = vector.load %arg2[%c0_1, %c0_2] : memref<16x128xf32, #tpu.memory_space<vmem>>, vector<16x128xf32>
    %cst = arith.constant dense<0.000000e+00> : vector<16x128xf32>
    %2 = tpu.matmul %0, %1, %cst {dimension_numbers = #tpu.dot_dimension_numbers<[1], [0], [0], [1], [0, 0, 1, 1], [], []>} : vector<16x16xf32>, vector<16x128xf32>, vector<16x128xf32> -> vector<16x128xf32>
    %c0_3 = arith.constant 0 : index
    %c0_4 = arith.constant 0 : index
    %3 = vector.load %arg3[%c0_3, %c0_4] : memref<1x128xf32, #tpu.memory_space<vmem>>, vector<1x128xf32>
    %4 = vector.broadcast %3 : vector<1x128xf32> to vector<16x128xf32>
    %5 = arith.addf %2, %4 : vector<16x128xf32>
    %cst_5 = arith.constant 0.000000e+00 : f32
    %6 = vector.broadcast %cst_5 : f32 to vector<16x128xf32>
    %7 = arith.maximumf %5, %6 : vector<16x128xf32>
    %c0_6 = arith.constant 0 : index
    %c0_7 = arith.constant 0 : index
    %8 = vector.load %arg4[%c0_6, %c0_7] : memref<128x128xf32, #tpu.memory_space<vmem>>, vector<128x128xf32>
    %cst_8 = arith.constant dense<0.000000e+00> : vector<16x128xf32>
    %9 = tpu.matmul %7, %8, %cst_8 {dimension_numbers = #tpu.dot_dimension_numbers<[1], [0], [0], [1], [0, 0, 1, 1], [], []>} : vector<16x128xf32>, vector<128x128xf32>, vector<16x128xf32> -> vector<16x128xf32>
    %c0_9 = arith.constant 0 : index
    %c0_10 = arith.constant 0 : index
    %10 = vector.load %arg5[%c0_9, %c0_10] : memref<1x128xf32, #tpu.memory_space<vmem>>, vector<1x128xf32>
    %11 = vector.broadcast %10 : vector<1x128xf32> to vector<16x128xf32>
    %12 = arith.addf %9, %11 : vector<16x128xf32>
    %cst_11 = arith.constant 0.000000e+00 : f32
    %13 = vector.broadcast %cst_11 : f32 to vector<16x128xf32>
    %14 = arith.maximumf %12, %13 : vector<16x128xf32>
    %c0_12 = arith.constant 0 : index
    %c0_13 = arith.constant 0 : index
    %15 = vector.load %arg6[%c0_12, %c0_13] : memref<128x128xf32, #tpu.memory_space<vmem>>, vector<128x128xf32>
    %cst_14 = arith.constant dense<0.000000e+00> : vector<16x128xf32>
    %16 = tpu.matmul %14, %15, %cst_14 {dimension_numbers = #tpu.dot_dimension_numbers<[1], [0], [0], [1], [0, 0, 1, 1], [], []>} : vector<16x128xf32>, vector<128x128xf32>, vector<16x128xf32> -> vector<16x128xf32>
    %c0_15 = arith.constant 0 : index
    %c0_16 = arith.constant 0 : index
    %17 = vector.load %arg7[%c0_15, %c0_16] : memref<1x128xf32, #tpu.memory_space<vmem>>, vector<1x128xf32>
    %18 = vector.broadcast %17 : vector<1x128xf32> to vector<16x128xf32>
    %19 = arith.addf %16, %18 : vector<16x128xf32>
    %20 = vector.extract_strided_slice %19 {offsets = [0, 0], sizes = [16, 4], strides = [1, 1]} : vector<16x128xf32> to vector<16x4xf32>
    %c0_17 = arith.constant 0 : index
    %c0_18 = arith.constant 0 : index
    %21 = vector.load %arg8[%c0_17, %c0_18] : memref<16x4xf32, #tpu.memory_space<vmem>>, vector<16x4xf32>
    tpu.vector_store %arg8[%c0_17, %c0_18], %20 {strides = array<i32>} : memref<16x4xf32, #tpu.memory_space<vmem>>, vector<16x4xf32>,
    return
  }
  func.func @transform_0(%arg0: i32) -> (i32, i32) {
    %c0_i32 = arith.constant 0 : i32
    %c0_i32_0 = arith.constant 0 : i32
    return %arg0, %c0_i32 : i32, i32
  }
  func.func @transform_1(%arg0: i32) -> (i32, i32) {
    %c0_i32 = arith.constant 0 : i32
    %c0_i32_0 = arith.constant 0 : i32
    %c0_i32_1 = arith.constant 0 : i32
    return %c0_i32, %c0_i32_0 : i32, i32
  }
  func.func @transform_2(%arg0: i32) -> (i32, i32) {
    %c0_i32 = arith.constant 0 : i32
    %c0_i32_0 = arith.constant 0 : i32
    %c0_i32_1 = arith.constant 0 : i32
    return %c0_i32, %c0_i32_0 : i32, i32
  }
  func.func @transform_3(%arg0: i32) -> (i32, i32) {
    %c0_i32 = arith.constant 0 : i32
    %c0_i32_0 = arith.constant 0 : i32
    %c0_i32_1 = arith.constant 0 : i32
    return %c0_i32, %c0_i32_0 : i32, i32
  }
  func.func @transform_4(%arg0: i32) -> (i32, i32) {
    %c0_i32 = arith.constant 0 : i32
    %c0_i32_0 = arith.constant 0 : i32
    %c0_i32_1 = arith.constant 0 : i32
    return %c0_i32, %c0_i32_0 : i32, i32
  }
  func.func @transform_5(%arg0: i32) -> (i32, i32) {
    %c0_i32 = arith.constant 0 : i32
    %c0_i32_0 = arith.constant 0 : i32
    %c0_i32_1 = arith.constant 0 : i32
    return %c0_i32, %c0_i32_0 : i32, i32
  }
  func.func @transform_6(%arg0: i32) -> (i32, i32) {
    %c0_i32 = arith.constant 0 : i32
    %c0_i32_0 = arith.constant 0 : i32
    %c0_i32_1 = arith.constant 0 : i32
    return %c0_i32, %c0_i32_0 : i32, i32
  }
  func.func @transform_7(%arg0: i32) -> (i32, i32) {
    %c0_i32 = arith.constant 0 : i32
    %c0_i32_0 = arith.constant 0 : i32
    return %arg0, %c0_i32 : i32, i32
  }
}

</mosaic_0001>

<bundles_post_ra>
// kernel: tpu_custom_call.1
= control target key start
LH: loop header
LB: loop body
LE: loop exit
PB: predicated region body
PF: predicated region fallthrough
CT: control target
= control target key end

     0   :  { %12 = vsyncpa [#allocation3], 0  ;;  %s811_s0 = inlined_call_operand.hbm [shape: f32[12,16], index: 0, kind: input, shape index: {}]   ;;  %s812_s1 = inlined_call_operand.hbm [shape: f32[16,128], index: 1, kind: input, shape index: {}]   ;;  %s813_s2 = inlined_call_operand.vmem [shape: f32[1,128], index: 2, kind: input, shape index: {}]   ;;  %s814_s3 = inlined_call_operand.hbm [shape: f32[128,128], index: 3, kind: input, shape index: {}]   ;;  %s815_s4 = inlined_call_operand.vmem [shape: f32[1,128], index: 4, kind: input, shape index: {}]   ;;  %s816_s5 = inlined_call_operand.hbm [shape: f32[128,128], index: 5, kind: input, shape index: {}]   ;;  %s817_s6 = inlined_call_operand.vmem [shape: f32[1,128], index: 6, kind: input, shape index: {}]   ;;  %s818_s7 = inlined_call_operand.vmem [shape: f32[12,4], index: 7, kind: output, shape index: {}]  }
   0x1   :  { %13 = vsyncpa [#allocation5], 0 }
   0x2   :  { %14 = vsyncpa [#allocation8], 0  ;;  %s674_s24 = smov [#allocation4]   ;;  %s675_s26 = smov [#allocation2]  }
   0x3   :  { %s32_s25 = sshll.u32 %s674_s24, 4  ;;  %s20_s27 = sshll.u32 %s675_s26, 4  ;;  %s33_s25 = int_to_ptr.vmem [resolvable:$true] %s32_s25  ;;  %s720_s27 = int_to_ptr.vmem [resolvable:$true] %s20_s27 }
   0x4   :  { %s580_s30 = scalar_lea.hbm %s812_s1, 256 }
   0x5   :  { %p581_p0 = scmp.ne.s32.totalorder %s812_s1, %s580_s30  ;;  %p584_p1 = scmp.lt.u32.totalorder %s580_s30, %s812_s1 }
   0x7   :  { %p586_p2 = pnand %p584_p1, %p581_p0 }
   0x9   :  { %589 = shalt.err (!%p586_p2)
}
   0xa   :  { %s590_s12 = scalar_lea.vmem %s33_s25, 256  ;;  %p595_p4 = scmp.lt.s32.totalorder %s33_s25, %s33_s25 }
   0xb   :  { %p591_p3 = scmp.ne.s32.totalorder %s33_s25, %s590_s12  ;;  %p596_p5 = scmp.lt.s32.totalorder %s590_s12, %s590_s12 }
   0xd   :  { %p597_p6 = por %p596_p5, %p595_p4 }
   0xf   :  { %p598_p7 = pnand %p597_p6, %p591_p3 }
  0x11   :  { %601 = shalt.err (!%p598_p7)
}
  0x12   :  { %s676_s13 = smov 128   ;;  %s677_s14 = smov 8  }
  0x13   :  { %38 = dma.hbm_to_vmem [thread:$0]  %s812_s1, 256, %s33_s25, [#allocation5], %s676_s13, %s676_s13, %s677_s14  }
  0x14   :  { %s602_s19 = scalar_lea.hbm %s811_s0, 256 }
  0x15   :  { %p603_p8 = scmp.ne.s32.totalorder %s811_s0, %s602_s19  ;;  %p606_p9 = scmp.lt.u32.totalorder %s602_s19, %s811_s0 }
  0x17   :  { %p608_p10 = pnand %p606_p9, %p603_p8 }
  0x19   :  { %611 = shalt.err (!%p608_p10)
}
  0x1a   :  { %s612_s24 = scalar_lea.vmem %s720_s27, 256  ;;  %p617_p12 = scmp.lt.s32.totalorder %s720_s27, %s720_s27 }
  0x1b   :  { %p613_p11 = scmp.ne.s32.totalorder %s720_s27, %s612_s24  ;;  %p618_p13 = scmp.lt.s32.totalorder %s612_s24, %s612_s24 }
  0x1d   :  { %p619_p0 = por %p618_p13, %p617_p12 }
  0x1f   :  { %p620_p1 = pnand %p619_p0, %p613_p11 }
  0x21   :  { %623 = shalt.err (!%p620_p1)
}
  0x22   :  { %26 = dma.hbm_to_vmem [thread:$0]  %s811_s0, 256, %s720_s27, [#allocation3], %s676_s13, %s676_s13, %s677_s14  }
  0x23   :  { %s678_s26 = smov [#allocation6]   ;;  %s679_s29 = smov [#allocation7]  }
  0x24   :  { %s46_s28 = sshll.u32 %s678_s26, 4  ;;  %s60_s30 = sshll.u32 %s679_s29, 4  ;;  %s47_s28 = int_to_ptr.vmem [resolvable:$true] %s46_s28  ;;  %s757_s30 = int_to_ptr.vmem [resolvable:$true] %s60_s30 }
  0x25   :  { %s624_s10 = scalar_lea.hbm %s814_s3, 2048 }
  0x26   :  { %p625_p2 = scmp.ne.s32.totalorder %s814_s3, %s624_s10  ;;  %p628_p3 = scmp.lt.u32.totalorder %s624_s10, %s814_s3 }
  0x28   :  { %p630_p4 = pnand %p628_p3, %p625_p2 }
  0x2a   :  { %633 = shalt.err (!%p630_p4)
}
  0x2b   :  { %s634_s0 = scalar_lea.vmem %s47_s28, 2048  ;;  %p639_p6 = scmp.lt.s32.totalorder %s47_s28, %s47_s28 }
  0x2c   :  { %p635_p5 = scmp.ne.s32.totalorder %s47_s28, %s634_s0  ;;  %p640_p7 = scmp.lt.s32.totalorder %s634_s0, %s634_s0 }
  0x2e   :  { %p641_p8 = por %p640_p7, %p639_p6 }
  0x30   :  { %p642_p9 = pnand %p641_p8, %p635_p5 }
  0x32   :  { %645 = shalt.err (!%p642_p9)
}
  0x33   :  { %52 = dma.hbm_to_vmem [thread:$0]  %s814_s3, 2048, %s47_s28, [#allocation5], %s676_s13, %s676_s13, %s677_s14  }
  0x34   :  { %s646_s20 = scalar_lea.hbm %s816_s5, 2048 }
  0x35   :  { %p647_p10 = scmp.ne.s32.totalorder %s816_s5, %s646_s20  ;;  %p650_p11 = scmp.lt.u32.totalorder %s646_s20, %s816_s5 }
  0x37   :  { %p652_p12 = pnand %p650_p11, %p647_p10 }
  0x39   :  { %655 = shalt.err (!%p652_p12)
}
  0x3a   :  { %s656_s1 = scalar_lea.vmem %s757_s30, 2048  ;;  %p661_p0 = scmp.lt.s32.totalorder %s757_s30, %s757_s30 }
  0x3b   :  { %p657_p13 = scmp.ne.s32.totalorder %s757_s30, %s656_s1  ;;  %p662_p1 = scmp.lt.s32.totalorder %s656_s1, %s656_s1 }
  0x3d   :  { %p663_p2 = por %p662_p1, %p661_p0 }
  0x3f   :  { %p664_p3 = pnand %p663_p2, %p657_p13 }
  0x41   :  { %667 = shalt.err (!%p664_p3)
}
  0x42   :  { %66 = dma.hbm_to_vmem [thread:$0]  %s816_s5, 2048, %s757_s30, [#allocation8], %s676_s13, %s676_s13, %s677_s14  }
  0x43   :  { %668 = dma.done.wait [#allocation3], 256  }
  0x44   :  { %669 = vsyncadd [#allocation3], 4294967040 }
  0x45   :  { %670 = dma.done.wait [#allocation5], 2304  }
  0x46   :  { %671 = vsyncadd [#allocation5], 4294964992 }
  0x47   :  { %672 = dma.done.wait [#allocation8], 2048  }
  0x48   :  { %673 = vsyncadd [#allocation8], 4294965248  ;;  %vm92_vm0 = vcmask 130048   ;;  %v83_v0 = vld [vmem:[#allocation4] sm:$0xff]  ;;  %v84_v1 = vld [vmem:[#allocation4 + $0x8] sm:$0xff]  ;;  %vm374_vm1 = vcmask 31744  }
  0x49   :  { %v81_v2 = vld [vmem:[#allocation2] sm:$0xff]  ;;  %v506_v3 = vpack.c.bf16 %v84_v1, %v83_v0  ;;  %v177_v5 = vld [vmem:[#allocation6 + $0x8] sm:$0xff]  ;;  %v178_v7 = vld [vmem:[#allocation6 + $0x10] sm:$0xff] }
  0x4a   :  { %433 = vmatprep.mubr.msk.f32.mxu0 %vm92_vm0, %v81_v2  ;;  %v176_v4 = vld [vmem:[#allocation6] sm:$0xff]  ;;  %v179_v8 = vld [vmem:[#allocation6 + $0x18] sm:$0xff]  ;;  %v181_v11 = vld [vmem:[#allocation6 + $0x28] sm:$0xff] }
  0x4b   :  { %v510_v6 = vpack.c.bf16 %v177_v5, %v176_v4  ;;  %507 = vmatprep.subr.bf16.mxu0 %v506_v3  ;;  %v514_v9 = vpack.c.bf16 %v179_v8, %v178_v7  ;;  %v180_v10 = vld [vmem:[#allocation6 + $0x20] sm:$0xff]  ;;  %v82_v12 = vld [vmem:[#allocation2 + $0x8] sm:$0xff]  ;;  %v182_v14 = vld [vmem:[#allocation6 + $0x30] sm:$0xff] }
  0x4c   :  { %509 = vmatpush3.bf16.msra.mxu0 %v506_v3  ;;  %v518_v13 = vpack.c.bf16 %v181_v11, %v180_v10  ;;  %v183_v15 = vld [vmem:[#allocation6 + $0x38] sm:$0xff]  ;;  %v184_v17 = vld [vmem:[#allocation6 + $0x40] sm:$0xff]  ;;  %v185_v18 = vld [vmem:[#allocation6 + $0x48] sm:$0xff] }
  0x4d   :  { %511 = vmatprep.subr.bf16.mxu1 %v510_v6  ;;  %v522_v16 = vpack.c.bf16 %v183_v15, %v182_v14  ;;  %v526_v19 = vpack.c.bf16 %v185_v18, %v184_v17  ;;  %v186_v20 = vld [vmem:[#allocation6 + $0x50] sm:$0xff]  ;;  %v187_v21 = vld [vmem:[#allocation6 + $0x58] sm:$0xff]  ;;  %v188_v23 = vld [vmem:[#allocation6 + $0x60] sm:$0xff] }
  0x4e   :  { %513 = vmatpush3.bf16.msra.mxu1 %v510_v6  ;;  %v530_v22 = vpack.c.bf16 %v187_v21, %v186_v20  ;;  %v189_v24 = vld [vmem:[#allocation6 + $0x68] sm:$0xff]  ;;  %v190_v26 = vld [vmem:[#allocation6 + $0x70] sm:$0xff]  ;;  %v191_v27 = vld [vmem:[#allocation6 + $0x78] sm:$0xff] }
  0x4f   :  { %515 = vmatprep.subr.bf16.mxu1 %v514_v9  ;;  %434 = vmatmul.mubr.msk.f32.vlgmr.msra.gmra.mrb[0].mxu0 %vm92_vm0, %v82_v12  ;;  %v534_v25 = vpack.c.bf16 %v189_v24, %v188_v23  ;;  %v538_v28 = vpack.c.bf16 %v191_v27, %v190_v26  ;;  %v276_v29 = vld [vmem:[#allocation7] sm:$0xff]  ;;  %v277_v30 = vld [vmem:[#allocation7 + $0x8] sm:$0xff]  ;;  %v278_v31 = vld [vmem:[#allocation7 + $0x10] sm:$0xff] }
  0x50   :  { %v542_v32 = vpack.c.bf16 %v277_v30, %v276_v29  ;;  %v279_v33 = vld [vmem:[#allocation7 + $0x18] sm:$0xff]  ;;  %v280_v35 = vld [vmem:[#allocation7 + $0x20] sm:$0xff]  ;;  %v281_v36 = vld [vmem:[#allocation7 + $0x28] sm:$0xff] }
  0x51   :  { %v546_v34 = vpack.c.bf16 %v279_v33, %v278_v31  ;;  %v550_v37 = vpack.c.bf16 %v281_v36, %v280_v35  ;;  %v282_v38 = vld [vmem:[#allocation7 + $0x30] sm:$0xff]  ;;  %v283_v39 = vld [vmem:[#allocation7 + $0x38] sm:$0xff]  ;;  %v284_v41 = vld [vmem:[#allocation7 + $0x40] sm:$0xff] }
  0x52   :  { %517 = vmatpush3.bf16.msra.mxu1 %v514_v9  ;;  %543 = vmatprep.subr.bf16.mxu0 %v542_v32  ;;  %v554_v40 = vpack.c.bf16 %v283_v39, %v282_v38  ;;  %v285_v42 = vld [vmem:[#allocation7 + $0x48] sm:$0xff]  ;;  %v286_v44 = vld [vmem:[#allocation7 + $0x50] sm:$0xff]  ;;  %v287_v45 = vld [vmem:[#allocation7 + $0x58] sm:$0xff] }
  0x53   :  { %519 = vmatprep.subr.bf16.mxu1 %v518_v13  ;;  %545 = vmatpush3.bf16.msra.mxu0 %v542_v32  ;;  %v558_v43 = vpack.c.bf16 %v285_v42, %v284_v41  ;;  %v562_v46 = vpack.c.bf16 %v287_v45, %v286_v44  ;;  %v288_v47 = vld [vmem:[#allocation7 + $0x60] sm:$0xff]  ;;  %v289_v48 = vld [vmem:[#allocation7 + $0x68] sm:$0xff]  ;;  %v290_v57 = vld [vmem:[#allocation7 + $0x70] sm:$0xff] }
  0x54   :  { %547 = vmatprep.subr.bf16.mxu0 %v546_v34  ;;  %v566_v49 = vpack.c.bf16 %v289_v48, %v288_v47  ;;  %v384_v50 = vld [vmem:[%s813_s2] ss:$0 sm:$0xff]  ;;  %v291_v58 = vld [vmem:[#allocation7 + $0x78] sm:$0xff] }
  0x55   :  { %v570_v59 = vpack.c.bf16 %v291_v58, %v290_v57  ;;  %v387_v60 = vld [vmem:[%s815_s4] ss:$0 sm:$0xff] }
  0x56   :  { %521 = vmatpush3.bf16.msra.mxu1 %v518_v13  ;;  %v388_v3 = vld [vmem:[%s817_s6] ss:$0 sm:$0xff] }
  0x57   :  { %523 = vmatprep.subr.bf16.mxu1 %v522_v16  ;;  %549 = vmatpush3.bf16.msra.mxu0 %v546_v34 }
  0x58   :  { %551 = vmatprep.subr.bf16.mxu0 %v550_v37 }
  0x5a   :  { %525 = vmatpush3.bf16.msra.mxu1 %v522_v16 }
  0x5b   :  { %527 = vmatprep.subr.bf16.mxu1 %v526_v19  ;;  %553 = vmatpush3.bf16.msra.mxu0 %v550_v37 }
  0x5c   :  { %555 = vmatprep.subr.bf16.mxu0 %v554_v40 }
  0x5e   :  { %529 = vmatpush3.bf16.msra.mxu1 %v526_v19 }
  0x5f   :  { %531 = vmatprep.subr.bf16.mxu1 %v530_v22  ;;  %557 = vmatpush3.bf16.msra.mxu0 %v554_v40 }
  0x60   :  { %559 = vmatprep.subr.bf16.mxu0 %v558_v43 }
  0x62   :  { %533 = vmatpush3.bf16.msra.mxu1 %v530_v22 }
  0x63   :  { %535 = vmatprep.subr.bf16.mxu1 %v534_v25  ;;  %561 = vmatpush3.bf16.msra.mxu0 %v558_v43 }
  0x64   :  { %563 = vmatprep.subr.bf16.mxu0 %v562_v46 }
  0x66   :  { %537 = vmatpush3.bf16.msra.mxu1 %v534_v25 }
  0x67   :  { %539 = vmatprep.subr.bf16.mxu1 %v538_v28  ;;  %565 = vmatpush3.bf16.msra.mxu0 %v562_v46 }
  0x68   :  { %567 = vmatprep.subr.bf16.mxu0 %v566_v49 }
  0x6a   :  { %541 = vmatpush3.bf16.msra.mxu1 %v538_v28 }
  0x6b   :  { %569 = vmatpush3.bf16.msra.mxu0 %v566_v49 }
  0x6c   :  { %571 = vmatprep.subr.bf16.mxu0 %v570_v59 }
  0x6f   :  { %573 = vmatpush3.bf16.msra.mxu0 %v570_v59 }
 0x122   :  { %v435_v51 = vpop.f32.mrb[0].mxu0 }
 0x123   :  { %v171_v52 = vadd.f32 %v435_v51, %v384_v50  ;;  %v165_v53 = vpop.f32.mrb[1].mxu0 }
 0x124   :  { %v166_v54 = vadd.f32 %v384_v50, %v165_v53 }
 0x125   :  { %v175_v56 = vmax.f32 %v171_v52, 0.0 }
 0x126   :  { %v174_v55 = vmax.f32 %v166_v54, 0.0 }
 0x128   :  { %468 = vmatprep.mubr.f32.mxu1 %v174_v55 }
 0x129   :  { %469 = vmatmul.mubr.f32.vlgmr.msra.gmra.mrb[0].mxu1 %v175_v56 }
 0x1fc   :  { %v470_v61 = vpop.f32.mrb[0].mxu1 }
 0x1fd   :  { %v271_v62 = vadd.f32 %v470_v61, %v387_v60  ;;  %v265_v63 = vpop.f32.mrb[1].mxu1 }
 0x1fe   :  { %v266_v0 = vadd.f32 %v387_v60, %v265_v63 }
 0x1ff   :  { %v275_v2 = vmax.f32 %v271_v62, 0.0 }
 0x200   :  { %v274_v1 = vmax.f32 %v266_v0, 0.0 }
 0x202   :  { %503 = vmatprep.mubr.f32.mxu0 %v274_v1 }
 0x203   :  { %504 = vmatmul.mubr.f32.vlgmr.msra.gmra.mrb[2].mxu0 %v275_v2 }
 0x2d6   :  { %v505_v4 = vpop.f32.mrb[2].mxu0 }
 0x2d7   :  { %v371_v5 = vadd.f32 %v505_v4, %v388_v3  ;;  %v365_v6 = vpop.f32.mrb[3].mxu0 }
 0x2d8   :  { %v366_v7 = vadd.f32 %v388_v3, %v365_v6 }
 0x2d9   :  { %376 = vst.msk [vmem:[%s818_s7 + $0x8] sm:$0xff] %vm374_vm1, %v371_v5 }
 0x2da   :  { %375 = vst.msk [vmem:[%s818_s7] sm:$0xff] %vm374_vm1, %v366_v7 }
 0x2db   :  { %381 = vsyncpa [#allocation3], 1 }
 0x2dc   :  { %382 = vsyncpa [#allocation5], 1 }
 0x2dd   :  { %383 = vsyncpa [#allocation8], 1 }

</bundles_post_ra>
